<compile_context>
chip_gen: v7x
topology: tpu7x:2x2x1
jax: 0.10.0
libtpu: 0.0.40
codegen_flags: <defaults>
</compile_context>

<pallas_src>
import math

import jax
import jax.numpy as jnp
from jax.experimental import pallas as pl
from jax.experimental.pallas import tpu as pltpu


def _integrate_velocity_kernel(L_ref, pos0_ref, mask_ref, vel_ref, out_ref, carry_ref):
    # L_ref:     (Tb, Tb)  lower-triangular ones (constant across the grid)
    # pos0_ref:  (1, Lb)   position time-step 0 for this lane block
    # mask_ref:  (1, Lb)   int32 channel mask (1 -> integrate, 0 -> passthrough)
    # vel_ref:   (Tb, Lb)  velocity block
    # out_ref:   (Tb, Lb)
    # carry_ref: (1, Lb)   f32 running sum carried across time blocks
    tb = pl.program_id(1)

    @pl.when(tb == 0)
    def _():
        carry_ref[...] = jnp.zeros_like(carry_ref)

    x = vel_ref[...]                                     # (Tb, Lb), input dtype
    Tb = x.shape[0]

    # Splice position[..., 0, :] into row 0 of the very first time block only.
    row_is0 = jax.lax.broadcasted_iota(jnp.int32, x.shape, 0) == 0
    x = jnp.where(row_is0 & (tb == 0), pos0_ref[...], x)

    # Block prefix-sum on the MXU: cum[t] = carry + sum_{s <= t within block} x[s]
    cum = jnp.dot(L_ref[...], x, preferred_element_type=jnp.float32) + carry_ref[...]

    # New carry = total sum through this block = last row of cum.
    carry_ref[...] = cum[Tb - 1:Tb, :]

    chan_mask = mask_ref[...] != 0                       # (1, Lb) -> broadcasts over rows
    out_ref[...] = jnp.where(chan_mask, cum, x.astype(jnp.float32)).astype(out_ref.dtype)


def _round_up(x: int, m: int) -> int:
    return ((x + m - 1) // m) * m


def integrate_velocity(
    velocity: jax.Array,
    position: jax.Array,
    ignore_y: bool = True,
    *,
    t_block_cap: int = 256,
    lane_block_cap: int = 1024,
) -> jax.Array:
    """velocity, position: (..., T, C) with C >= 3. Returns same shape."""
    assert velocity.shape == position.shape
    assert velocity.ndim >= 2
    orig_shape = velocity.shape
    *lead, T, C = orig_shape
    B = math.prod(lead) if lead else 1
    ncols = B * C

    vel3 = velocity.reshape(B, T, C)
    pos3 = position.reshape(B, T, C)

    # Lane-dense layout: column j = b*C + c; cumsum runs down axis 0 (time).
    vel2d = jnp.transpose(vel3, (1, 0, 2)).reshape(T, ncols)
    pos0 = pos3[:, 0, :].reshape(1, ncols)               # only time-step 0 is needed

    chan = jnp.arange(ncols, dtype=jnp.int32) % C
    if ignore_y:
        mask = (chan == 0) | (chan == 2)
    else:
        mask = chan <= 2
    mask2d = mask.astype(jnp.int32).reshape(1, ncols)

    # Tile sizes aligned to (8, 128); pad inputs so every block is full.
    assert t_block_cap % 8 == 0 and lane_block_cap % 128 == 0
    Tb = min(t_block_cap, _round_up(T, 8))
    Lb = min(lane_block_cap, _round_up(ncols, 128))
    Tp = _round_up(T, Tb)
    Lp = _round_up(ncols, Lb)

    if (Tp, Lp) != (T, ncols):
        vel2d = jnp.pad(vel2d, ((0, Tp - T), (0, Lp - ncols)))
        pos0 = jnp.pad(pos0, ((0, 0), (0, Lp - ncols)))
        mask2d = jnp.pad(mask2d, ((0, 0), (0, Lp - ncols)))

    n_tb = Tp // Tb
    n_cb = Lp // Lb

    # Triangular matrix built once; constant index_map => fetched a single time.
    L = jnp.tril(jnp.ones((Tb, Tb), dtype=velocity.dtype))

    out2d = pl.pallas_call(
        _integrate_velocity_kernel,
        out_shape=jax.ShapeDtypeStruct((Tp, Lp), velocity.dtype),
        grid=(n_cb, n_tb),
        in_specs=[
            pl.BlockSpec((Tb, Tb), lambda cb, tb: (0, 0)),    # L (never re-fetched)
            pl.BlockSpec((1, Lb), lambda cb, tb: (0, cb)),    # position row 0
            pl.BlockSpec((1, Lb), lambda cb, tb: (0, cb)),    # channel mask
            pl.BlockSpec((Tb, Lb), lambda cb, tb: (tb, cb)),  # velocity block
        ],
        out_specs=pl.BlockSpec((Tb, Lb), lambda cb, tb: (tb, cb)),
        scratch_shapes=[pltpu.VMEM((1, Lb), jnp.float32)],    # running-sum carry
        compiler_params=pltpu.CompilerParams(
            dimension_semantics=("parallel", "arbitrary")),
    )(L, pos0, mask2d, vel2d)

    out2d = out2d[:T, :ncols]
    out = jnp.transpose(out2d.reshape(T, B, C), (1, 0, 2))
    return out.reshape(orig_shape)


def _reference(velocity, position, ignore_y=True):
    mask = jnp.array([0, 2] if ignore_y else [0, 1, 2])
    x = velocity.at[..., 0, :].set(position[..., 0, :])
    cum = jnp.cumsum(x, axis=-2)
    return x.at[..., mask].set(cum[..., mask])


if __name__ == "__main__":
    key = jax.random.PRNGKey(0)

    # Case 1: canonical small shape, ignore_y=True, single tile (exercises padding
    # of both T->8-aligned (already) and ncols 6 -> 128).
    k1, k2 = jax.random.split(key)
    B, T, C = 2, 8, 3
    velocity = jax.random.normal(k1, (B, T, C), dtype=jnp.float32)
    position = jax.random.normal(k2, (B, T, C), dtype=jnp.float32)
    out = jax.block_until_ready(integrate_velocity(velocity, position, ignore_y=True))
    ref = _reference(velocity, position, ignore_y=True)
    assert out.shape == (B, T, C)
    assert jnp.allclose(out, ref, atol=1e-5, rtol=1e-5), "mismatch vs reference (case 1)"

    # Case 2: ignore_y=False, C>3, small t_block_cap to exercise the blocked cumsum
    # with the VMEM carry across multiple time blocks.
    k3, k4 = jax.random.split(k2)
    B2, T2, C2 = 2, 24, 4
    velocity2 = jax.random.normal(k3, (B2, T2, C2), dtype=jnp.float32)
    position2 = jax.random.normal(k4, (B2, T2, C2), dtype=jnp.float32)
    out2 = jax.block_until_ready(
        integrate_velocity(velocity2, position2, ignore_y=False, t_block_cap=8))
    ref2 = _reference(velocity2, position2, ignore_y=False)
    assert out2.shape == (B2, T2, C2)
    assert jnp.allclose(out2, ref2, atol=1e-5, rtol=1e-5), "mismatch vs reference (case 2)"

    # Case 3: non-8-multiple T and tiny lane count -> exercises time/lane padding path.
    k5, k6 = jax.random.split(k4)
    B3, T3, C3 = 3, 10, 3
    velocity3 = jax.random.normal(k5, (B3, T3, C3), dtype=jnp.float32)
    position3 = jax.random.normal(k6, (B3, T3, C3), dtype=jnp.float32)
    out3 = jax.block_until_ready(integrate_velocity(velocity3, position3, ignore_y=True))
    ref3 = _reference(velocity3, position3, ignore_y=True)
    assert out3.shape == (B3, T3, C3)
    assert jnp.allclose(out3, ref3, atol=1e-5, rtol=1e-5), "mismatch vs reference (case 3)"

    print("KERNEL_OK")
</pallas_src>

<mosaic_0001>
module attributes {stable_mosaic.version = 11 : i64} {
  func.func @_integrate_velocity_kernel(%arg0: i32, %arg1: i32, %arg2: memref<8x8xf32, #tpu.memory_space<vmem>>, %arg3: memref<1x128xf32, #tpu.memory_space<vmem>>, %arg4: memref<1x128xi32, #tpu.memory_space<vmem>>, %arg5: memref<8x128xf32, #tpu.memory_space<vmem>>, %arg6: memref<8x128xf32, #tpu.memory_space<vmem>>, %arg7: memref<1x128xf32, #tpu.memory_space<vmem>>) attributes {dimension_semantics = [#tpu.dimension_semantics<parallel>, #tpu.dimension_semantics<arbitrary>], iteration_bounds = array<i64: 1, 1>, scalar_prefetch = 0 : i64, scratch_operands = 1 : i64, tpu.core_type = #tpu.core_type<tc>, window_params = [{pipeline_mode = #tpu.pipeline_mode<synchronous>, transform_indices = @transform_0, window_bounds = array<i64: 8, 8>}, {transform_indices = @transform_1, window_bounds = array<i64: 1, 128>}, {transform_indices = @transform_2, window_bounds = array<i64: 1, 128>}, {transform_indices = @transform_3, window_bounds = array<i64: 8, 128>}, {transform_indices = @transform_4, window_bounds = array<i64: 8, 128>}]} {
    %c0_i32 = arith.constant 0 : i32
    %0 = arith.cmpi eq, %arg1, %c0_i32 : i32
    %1 = arith.extui %0 : i1 to i32
    %c0_i32_0 = arith.constant 0 : i32
    %2 = arith.cmpi ne, %1, %c0_i32_0 : i32
    scf.if %2 {
      %cst_17 = arith.constant 0.000000e+00 : f32
      %28 = vector.broadcast %cst_17 : f32 to vector<1x128xf32>
      %c0_18 = arith.constant 0 : index
      %c0_19 = arith.constant 0 : index
      %29 = vector.load %arg7[%c0_18, %c0_19] : memref<1x128xf32, #tpu.memory_space<vmem>>, vector<1x128xf32>
      tpu.vector_store %arg7[%c0_18, %c0_19], %28 {strides = array<i32>} : memref<1x128xf32, #tpu.memory_space<vmem>>, vector<1x128xf32>,
    } else {
    }
    %c0 = arith.constant 0 : index
    %c0_1 = arith.constant 0 : index
    %3 = vector.load %arg5[%c0, %c0_1] : memref<8x128xf32, #tpu.memory_space<vmem>>, vector<8x128xf32>
    %4 = tpu.iota {dimensions = array<i32: 0>} : vector<8x128xi32>
    %c0_i32_2 = arith.constant 0 : i32
    %5 = vector.broadcast %c0_i32_2 : i32 to vector<8x128xi32>
    %6 = arith.cmpi eq, %4, %5 : vector<8x128xi32>
    %c0_i32_3 = arith.constant 0 : i32
    %7 = arith.cmpi eq, %arg1, %c0_i32_3 : i32
    %8 = vector.broadcast %7 : i1 to vector<8x128xi1>
    %9 = arith.andi %6, %8 : vector<8x128xi1>
    %c0_4 = arith.constant 0 : index
    %c0_5 = arith.constant 0 : index
    %10 = vector.load %arg3[%c0_4, %c0_5] : memref<1x128xf32, #tpu.memory_space<vmem>>, vector<1x128xf32>
    %11 = vector.shape_cast %10 : vector<1x128xf32> to vector<1x128xf32>
    %12 = vector.broadcast %11 : vector<1x128xf32> to vector<8x128xf32>
    %13 = arith.select %9, %12, %3 : vector<8x128xi1>, vector<8x128xf32>
    %c0_6 = arith.constant 0 : index
    %c0_7 = arith.constant 0 : index
    %14 = vector.load %arg2[%c0_6, %c0_7] : memref<8x8xf32, #tpu.memory_space<vmem>>, vector<8x8xf32>
    %cst = arith.constant dense<0.000000e+00> : vector<8x128xf32>
    %15 = tpu.matmul %14, %13, %cst {dimension_numbers = #tpu.dot_dimension_numbers<[1], [0], [0], [1], [0, 0, 1, 1], [], []>} : vector<8x8xf32>, vector<8x128xf32>, vector<8x128xf32> -> vector<8x128xf32>
    %c0_8 = arith.constant 0 : index
    %c0_9 = arith.constant 0 : index
    %16 = vector.load %arg7[%c0_8, %c0_9] : memref<1x128xf32, #tpu.memory_space<vmem>>, vector<1x128xf32>
    %17 = vector.broadcast %16 : vector<1x128xf32> to vector<8x128xf32>
    %18 = arith.addf %15, %17 : vector<8x128xf32>
    %19 = vector.extract_strided_slice %18 {offsets = [7, 0], sizes = [1, 128], strides = [1, 1]} : vector<8x128xf32> to vector<1x128xf32>
    %c0_10 = arith.constant 0 : index
    %c0_11 = arith.constant 0 : index
    %20 = vector.load %arg7[%c0_10, %c0_11] : memref<1x128xf32, #tpu.memory_space<vmem>>, vector<1x128xf32>
    tpu.vector_store %arg7[%c0_10, %c0_11], %19 {strides = array<i32>} : memref<1x128xf32, #tpu.memory_space<vmem>>, vector<1x128xf32>,
    %c0_12 = arith.constant 0 : index
    %c0_13 = arith.constant 0 : index
    %21 = vector.load %arg4[%c0_12, %c0_13] : memref<1x128xi32, #tpu.memory_space<vmem>>, vector<1x128xi32>
    %c0_i32_14 = arith.constant 0 : i32
    %22 = vector.broadcast %c0_i32_14 : i32 to vector<1x128xi32>
    %23 = arith.cmpi ne, %21, %22 : vector<1x128xi32>
    %24 = vector.shape_cast %23 : vector<1x128xi1> to vector<1x128xi1>
    %25 = vector.broadcast %24 : vector<1x128xi1> to vector<8x128xi1>
    %26 = arith.select %25, %18, %13 : vector<8x128xi1>, vector<8x128xf32>
    %c0_15 = arith.constant 0 : index
    %c0_16 = arith.constant 0 : index
    %27 = vector.load %arg6[%c0_15, %c0_16] : memref<8x128xf32, #tpu.memory_space<vmem>>, vector<8x128xf32>
    tpu.vector_store %arg6[%c0_15, %c0_16], %26 {strides = array<i32>} : memref<8x128xf32, #tpu.memory_space<vmem>>, vector<8x128xf32>,
    return
  }
  func.func @transform_0(%arg0: i32, %arg1: i32) -> (i32, i32) {
    %c0_i32 = arith.constant 0 : i32
    %c0_i32_0 = arith.constant 0 : i32
    %c0_i32_1 = arith.constant 0 : i32
    return %c0_i32, %c0_i32_0 : i32, i32
  }
  func.func @transform_1(%arg0: i32, %arg1: i32) -> (i32, i32) {
    %c0_i32 = arith.constant 0 : i32
    %c0_i32_0 = arith.constant 0 : i32
    return %c0_i32, %arg0 : i32, i32
  }
  func.func @transform_2(%arg0: i32, %arg1: i32) -> (i32, i32) {
    %c0_i32 = arith.constant 0 : i32
    %c0_i32_0 = arith.constant 0 : i32
    return %c0_i32, %arg0 : i32, i32
  }
  func.func @transform_3(%arg0: i32, %arg1: i32) -> (i32, i32) {
    %c0_i32 = arith.constant 0 : i32
    return %arg1, %arg0 : i32, i32
  }
  func.func @transform_4(%arg0: i32, %arg1: i32) -> (i32, i32) {
    %c0_i32 = arith.constant 0 : i32
    return %arg1, %arg0 : i32, i32
  }
}

</mosaic_0001>

<bundles_post_ra>
// kernel: tpu_custom_call.1
= control target key start
LH: loop header
LB: loop body
LE: loop exit
PB: predicated region body
PF: predicated region fallthrough
CT: control target
= control target key end

     0   :  { %9 = vsyncpa [#allocation4], 0  ;;  %s285_s0 = inlined_call_operand.hbm [shape: f32[8,8], index: 0, kind: input, shape index: {}]   ;;  %s286_s1 = inlined_call_operand.vmem [shape: f32[1,128], index: 1, kind: input, shape index: {}]   ;;  %s287_s2 = inlined_call_operand.vmem [shape: s32[1,128], index: 2, kind: input, shape index: {}]   ;;  %s288_s3 = inlined_call_operand.vmem [shape: f32[8,128], index: 3, kind: input, shape index: {}]   ;;  %s289_s4 = inlined_call_operand.hbm [shape: f32[8,128], index: 4, kind: output, shape index: {}]  }
   0x1   :  { %10 = vsyncpa [#allocation5], 0  ;;  %s222_s15 = smov [#allocation3]   ;;  %s174_s19 = scalar_lea.hbm %s285_s0, 128 }
   0x2   :  { %s17_s16 = sshll.u32 %s222_s15, 4  ;;  %p175_p0 = scmp.ne.s32.totalorder %s285_s0, %s174_s19  ;;  %s18_s16 = int_to_ptr.vmem [resolvable:$true] %s17_s16 }
   0x3   :  { %p178_p1 = scmp.lt.u32.totalorder %s174_s19, %s285_s0 }
   0x5   :  { %p180_p2 = pnand %p178_p1, %p175_p0 }
   0x7   :  { %183 = shalt.err (!%p180_p2)
}
   0x8   :  { %s184_s24 = scalar_lea.vmem %s18_s16, 128  ;;  %p189_p4 = scmp.lt.s32.totalorder %s18_s16, %s18_s16 }
   0x9   :  { %p185_p3 = scmp.ne.s32.totalorder %s18_s16, %s184_s24  ;;  %p190_p5 = scmp.lt.s32.totalorder %s184_s24, %s184_s24 }
   0xb   :  { %p191_p6 = por %p190_p5, %p189_p4 }
   0xd   :  { %p192_p7 = pnand %p191_p6, %p185_p3 }
   0xf   :  { %195 = shalt.err (!%p192_p7)
}
  0x10   :  { %20 = dma.hbm_to_vmem [thread:$0]  %s285_s0, 128, %s18_s16, [#allocation4]  }
  0x11   :  { %218 = dma.done.wait [#allocation4], 128  }
  0x12   :  { %219 = vsyncadd [#allocation4], 4294967168  ;;  %v36_v0 = vlaneseq  ;;  %v223_v1 = vmov 0.0   ;;  %vm224_vm0 = vmmov 0   ;;  %v35_v3 = vld [vmem:[%s288_s3] sm:$0xff]  ;;  %vm59_vm2 = vcmask 64512  }
  0x13   :  { %34 = vst [vmem:[#allocation2] sm:$0x1] %v223_v1  ;;  %164 = vmatprep.subr.mxu0 %v223_v1  ;;  %166 = vmatprep.mubr.msk.f32.mxu0 %vm224_vm0, %v223_v1  ;;  %v159_v4 = vld [vmem:[%s286_s1] ss:$0 sm:$0xff]  ;;  %v51_v5 = vld [vmem:[#allocation3] sm:$0xff]  ;;  %v225_v9 = vmov 0  }
  0x14   :  { %v37_v2 = vshrl.u32 %v36_v0, 7  ;;  %v134_v7 = vld [vmem:[%s287_s2] sm:$0x1]  ;;  %s226_s3 = smov [#allocation6]  }
  0x15   :  { %vm135_vm3 = vcmp.ne.s32.totalorder %v134_v7, 0  ;;  %s150_s6 = sshll.u32 %s226_s3, 4  ;;  %s151_s6 = int_to_ptr.vmem [resolvable:$true] %s150_s6 }
  0x16   :  { %vm38_vm1 = vcmp.eq.s32.totalorder %v37_v2, 0  ;;  %v139_v8 = vsub.s32 0, %v37_v2  ;;  %v136_v10 = vsel %vm135_vm3, 1, %v225_v9  ;;  %s196_s1 = scalar_lea.vmem %s151_s6, 128  ;;  %p201_p9 = scmp.lt.s32.totalorder %s151_s6, %s151_s6 }
  0x17   :  { %v50_v6 = vsel %vm38_vm1, %v159_v4, %v35_v3  ;;  %p197_p8 = scmp.ne.s32.totalorder %s151_s6, %s196_s1  ;;  %p202_p10 = scmp.lt.s32.totalorder %s196_s1, %s196_s1 }
  0x18   :  { %165 = vmatpush3.msra.mxu0 %v50_v6  ;;  %v140_v11 = vrot.slane %v136_v10, %v139_v8 }
  0x19   :  { %167 = vmatmul.mubr.msk.f32.vlgmr.msra.gmra.mrb[0].mxu0 %vm59_vm2, %v51_v5  ;;  %p203_p11 = por %p202_p10, %p201_p9 }
  0x1a   :  { %v160_v12 = vld [vmem:[#allocation2] ss:$0 sm:$0xff]  ;;  %vm141_vm4 = vcmp.eq.s32.totalorder %v140_v11, 1 }
  0x1b   :  { %p204_p12 = pnand %p203_p11, %p197_p8 }
  0xec   :  { %v129_v13 = vpop.f32.mrb[0].mxu0 }
  0xed   :  { %v130_v14 = vadd.f32 %v160_v12, %v129_v13  ;;  %v168_v15 = vpop.f32.mrb[1].mxu0 }
  0xef   :  { %133 = vst [vmem:[#allocation2 - $0x7] sm:$0x80] %v130_v14  ;;  %v142_v16 = vsel %vm141_vm4, %v130_v14, %v50_v6 }
  0xf0   :  { %143 = vst [vmem:[#allocation6] sm:$0xff] %v142_v16 }
  0xf1   :  { %207 = shalt.err (!%p204_p12)
}
  0xf2   :  { %s208_s8 = scalar_lea.hbm %s289_s4, 128 }
  0xf3   :  { %p209_p13 = scmp.ne.s32.totalorder %s289_s4, %s208_s8  ;;  %p212_p0 = scmp.lt.u32.totalorder %s208_s8, %s289_s4 }
  0xf5   :  { %p214_p1 = pnand %p212_p0, %p209_p13 }
  0xf7   :  { %217 = shalt.err (!%p214_p1)
}
  0xf8   :  { %153 = dma.vmem_to_hbm [thread:$0]  %s151_s6, 128, %s289_s4, [#allocation5]  }
  0xf9   :  { %220 = dma.done.wait [#allocation5], 128  }
  0xfa   :  { %221 = vsyncadd [#allocation5], 4294967168 }
  0xfb   :  { %157 = vsyncpa [#allocation4], 1 }
  0xfc   :  { %158 = vsyncpa [#allocation5], 1 }

</bundles_post_ra>
